<compile_context>
chip_gen: v5e
topology: v5e:2x2
jax: 0.10.0
libtpu: 0.0.40
codegen_flags: <defaults>
</compile_context>

<pallas_src>
import functools
import math

import jax
import jax.numpy as jnp
from jax import lax
from jax.experimental import pallas as pl
from jax.experimental.pallas import tpu as pltpu

_LANE = 128
_SUBLANE = 8
_BN_EPS = 1e-5


def _round_up(x, m):
    return (x + m - 1) // m * m


def _vmem_limit(block_bytes):
    # double-buffered tiles + margin, clamped to a range valid on v5e/v6e/v7x
    return int(min(max(2 * int(block_bytes) + (4 << 20), 16 << 20), 64 << 20))


# ---------------------------------------------------------------------------
# Fused single-block kernel: used when the whole (padded) batch is one tile.
# ---------------------------------------------------------------------------
def _fused_kernel(x_ref, w1_ref, b1_ref, gamma_ref, beta_ref, w2_ref, b2_ref,
                  o_ref, *, n_valid, compute_dtype):
    f32 = jnp.float32
    h = jnp.dot(x_ref[...], w1_ref[...], preferred_element_type=f32) + b1_ref[...]

    n_pad = h.shape[0]
    if n_valid != n_pad:
        rows = lax.broadcasted_iota(jnp.int32, (n_pad, 1), 0)
        hm = h * (rows < n_valid).astype(f32)
    else:
        hm = h

    # One-pass batch statistics (training-mode BatchNorm1d, biased variance).
    inv_n = 1.0 / float(n_valid)
    mean = jnp.sum(hm, axis=0, keepdims=True) * inv_n
    var = jnp.maximum(jnp.sum(hm * hm, axis=0, keepdims=True) * inv_n - mean * mean, 0.0)
    scale = gamma_ref[...] * lax.rsqrt(var + _BN_EPS)
    shift = beta_ref[...] - mean * scale

    a = jnp.maximum(h * scale + shift, 0.0)
    z = jnp.dot(a.astype(compute_dtype), w2_ref[...], preferred_element_type=f32) + b2_ref[...]

    # F.normalize(p=2, dim=1): multiply by rsqrt(max(||z||^2, eps^2)).
    inv_norm = lax.rsqrt(jnp.maximum(jnp.sum(z * z, axis=1, keepdims=True), 1e-24))
    o_ref[...] = (z * inv_norm).astype(o_ref.dtype)


# ---------------------------------------------------------------------------
# Tiled path, pass 1: h = x @ w1 + b1 per batch tile + per-tile BN partials.
# ---------------------------------------------------------------------------
def _stage1_kernel(nvalid_ref, x_ref, w1_ref, b1_ref, h_ref, stats_ref, *, block_n):
    f32 = jnp.float32
    h = jnp.dot(x_ref[...], w1_ref[...], preferred_element_type=f32) + b1_ref[...]
    h_ref[...] = h
    # Mask rows beyond the valid batch so padded rows don't pollute BN stats.
    rows = pl.program_id(0) * block_n + lax.broadcasted_iota(jnp.int32, (block_n, 1), 0)
    hm = h * (rows < nvalid_ref[0]).astype(f32)
    stats_ref[0:1, :] = jnp.sum(hm, axis=0, keepdims=True)
    stats_ref[1:2, :] = jnp.sum(hm * hm, axis=0, keepdims=True)


# ---------------------------------------------------------------------------
# Tiled path, pass 2: folded BN affine -> ReLU -> projection -> L2 normalize.
# ---------------------------------------------------------------------------
def _stage2_kernel(h_ref, scale_ref, shift_ref, w2_ref, b2_ref, o_ref, *, compute_dtype):
    f32 = jnp.float32
    a = jnp.maximum(h_ref[...] * scale_ref[...] + shift_ref[...], 0.0)
    z = jnp.dot(a.astype(compute_dtype), w2_ref[...], preferred_element_type=f32) + b2_ref[...]
    inv_norm = lax.rsqrt(jnp.maximum(jnp.sum(z * z, axis=1, keepdims=True), 1e-24))
    o_ref[...] = (z * inv_norm).astype(o_ref.dtype)


def simclr_forward(x, w1, b1, gamma, beta, w2, b2, *,
                   block_n=None, compute_dtype=jnp.float32):
    """SimCLR forward. w1: (input_dim, emb), w2: (emb, out_dim), biases 1-D or (1, D)."""
    f32 = jnp.float32
    n, input_dim = x.shape
    emb = w1.shape[1]
    out_dim = w2.shape[1]

    if block_n is None:
        block_n = min(_round_up(n, _SUBLANE), 512)
    block_n = _round_up(block_n, _SUBLANE)
    n_pad = _round_up(n, block_n)
    num_tiles = n_pad // block_n
    out_pad = _round_up(out_dim, _LANE)          # lane-dense output stores
    itemsize = jnp.dtype(compute_dtype).itemsize

    x_c = x.astype(compute_dtype)
    if n_pad != n:
        x_c = jnp.pad(x_c, ((0, n_pad - n), (0, 0)))
    w1_c = w1.astype(compute_dtype)
    b1_r = jnp.asarray(b1, f32).reshape(1, emb)
    gamma_r = jnp.asarray(gamma, f32).reshape(1, emb)
    beta_r = jnp.asarray(beta, f32).reshape(1, emb)
    # Zero-pad the projection to 128-lane multiples (pad columns are zero, so
    # the row L2 norm is unchanged; sliced off before returning).
    w2_c = jnp.zeros((emb, out_pad), compute_dtype).at[:, :out_dim].set(w2.astype(compute_dtype))
    b2_r = jnp.zeros((1, out_pad), f32).at[:, :out_dim].set(jnp.asarray(b2, f32).reshape(1, out_dim))

    if num_tiles == 1:
        # Small batch: single fused launch, everything resident in VMEM.
        blk_bytes = (x_c.size * itemsize + w1_c.size * itemsize + w2_c.size * itemsize
                     + (b1_r.size + gamma_r.size + beta_r.size + b2_r.size) * 4
                     + n_pad * emb * 4 + n_pad * out_pad * 4)
        cost = pl.CostEstimate(
            flops=int(2 * n_pad * emb * (input_dim + out_pad) + 10 * n_pad * emb),
            transcendentals=int(emb + n_pad),
            bytes_accessed=int(blk_bytes),
        )
        vmem = pl.BlockSpec(memory_space=pltpu.MemorySpace.VMEM)
        out_p = pl.pallas_call(
            functools.partial(_fused_kernel, n_valid=n, compute_dtype=compute_dtype),
            out_shape=jax.ShapeDtypeStruct((n_pad, out_pad), f32),
            in_specs=[vmem] * 7,
            out_specs=vmem,
            compiler_params=pltpu.CompilerParams(vmem_limit_bytes=_vmem_limit(blk_bytes)),
            cost_estimate=cost,
        )(x_c, w1_c, b1_r, gamma_r, beta_r, w2_c, b2_r)
        return out_p[:n, :out_dim]

    # --------------------------- tiled two-pass path ------------------------
    nvalid = jnp.array([n], dtype=jnp.int32)

    blk1 = (block_n * input_dim * itemsize + w1_c.size * itemsize + emb * 4
            + block_n * emb * 4 + 2 * emb * 4)
    cost1 = pl.CostEstimate(
        flops=int(2 * n_pad * input_dim * emb + 5 * n_pad * emb),
        transcendentals=0,
        bytes_accessed=int(x_c.size * itemsize + w1_c.size * itemsize + emb * 4
                           + n_pad * emb * 4 + num_tiles * 2 * emb * 4),
    )
    h, stats = pl.pallas_call(
        functools.partial(_stage1_kernel, block_n=block_n),
        out_shape=(jax.ShapeDtypeStruct((n_pad, emb), f32),
                   jax.ShapeDtypeStruct((num_tiles, 2, emb), f32)),
        grid_spec=pltpu.PrefetchScalarGridSpec(
            num_scalar_prefetch=1,
            grid=(num_tiles,),
            in_specs=[
                pl.BlockSpec((block_n, input_dim), lambda i, nv: (i, 0)),
                pl.BlockSpec((input_dim, emb), lambda i, nv: (0, 0)),
                pl.BlockSpec((1, emb), lambda i, nv: (0, 0)),
            ],
            out_specs=[
                pl.BlockSpec((block_n, emb), lambda i, nv: (i, 0)),
                pl.BlockSpec((None, 2, emb), lambda i, nv: (i, 0, 0)),
            ],
        ),
        compiler_params=pltpu.CompilerParams(
            dimension_semantics=("parallel",),
            vmem_limit_bytes=_vmem_limit(blk1)),
        cost_estimate=cost1,
    )(nvalid, x_c, w1_c, b1_r)

    # Combine per-tile partial sums into full-batch BN stats (tiny, in JAX)
    # and fold gamma/beta into a single affine.
    sums = jnp.sum(stats[:, 0, :], axis=0, keepdims=True)
    sumsq = jnp.sum(stats[:, 1, :], axis=0, keepdims=True)
    mean = sums / n
    var = jnp.maximum(sumsq / n - mean * mean, 0.0)
    scale = gamma_r * lax.rsqrt(var + _BN_EPS)
    shift = beta_r - mean * scale

    blk2 = (block_n * emb * 4 + 2 * emb * 4 + w2_c.size * itemsize + out_pad * 4
            + block_n * out_pad * 4)
    cost2 = pl.CostEstimate(
        flops=int(2 * n_pad * emb * out_pad + 6 * n_pad * emb + 4 * n_pad * out_pad),
        transcendentals=int(n_pad),
        bytes_accessed=int(n_pad * emb * 4 + 2 * emb * 4 + w2_c.size * itemsize
                           + out_pad * 4 + n_pad * out_pad * 4),
    )
    out_p = pl.pallas_call(
        functools.partial(_stage2_kernel, compute_dtype=compute_dtype),
        out_shape=jax.ShapeDtypeStruct((n_pad, out_pad), f32),
        grid_spec=pltpu.PrefetchScalarGridSpec(
            num_scalar_prefetch=0,
            grid=(num_tiles,),
            in_specs=[
                pl.BlockSpec((block_n, emb), lambda i: (i, 0)),
                pl.BlockSpec((1, emb), lambda i: (0, 0)),
                pl.BlockSpec((1, emb), lambda i: (0, 0)),
                pl.BlockSpec((emb, out_pad), lambda i: (0, 0)),
                pl.BlockSpec((1, out_pad), lambda i: (0, 0)),
            ],
            out_specs=pl.BlockSpec((block_n, out_pad), lambda i: (i, 0)),
        ),
        compiler_params=pltpu.CompilerParams(
            dimension_semantics=("parallel",),
            vmem_limit_bytes=_vmem_limit(blk2)),
        cost_estimate=cost2,
    )(h, scale, shift, w2_c, b2_r)

    return out_p[:n, :out_dim]


def reference_forward(x, w1, b1, gamma, beta, w2, b2):
    h = x @ w1 + b1
    mean = jnp.mean(h, axis=0, keepdims=True)
    var = jnp.mean((h - mean) ** 2, axis=0, keepdims=True)
    h = (h - mean) / jnp.sqrt(var + _BN_EPS) * gamma + beta
    h = jnp.maximum(h, 0.0)
    z = h @ w2 + b2
    norm = jnp.maximum(jnp.linalg.norm(z, axis=1, keepdims=True), 1e-12)
    return z / norm


if __name__ == "__main__":
    # SimCLR(input_dim=64, emb=128, out_dim=32)
    input_dim, emb, out_dim = 64, 128, 32
    key = jax.random.PRNGKey(0)
    kx, kw1, kb1, kw2, kb2, kx2 = jax.random.split(key, 6)

    lim1 = 1.0 / math.sqrt(input_dim)
    w1 = jax.random.uniform(kw1, (input_dim, emb), jnp.float32, -lim1, lim1)
    b1 = jax.random.uniform(kb1, (emb,), jnp.float32, -lim1, lim1)
    gamma = jnp.ones((emb,), jnp.float32)    # BatchNorm1d weight
    beta = jnp.zeros((emb,), jnp.float32)    # BatchNorm1d bias
    lim2 = 1.0 / math.sqrt(emb)
    w2 = jax.random.uniform(kw2, (emb, out_dim), jnp.float32, -lim2, lim2)
    b2 = jax.random.uniform(kb2, (out_dim,), jnp.float32, -lim2, lim2)

    # 1) small batch -> single fused launch (f32, exact semantics)
    x = jax.random.normal(kx, (8, input_dim), jnp.float32)
    out = simclr_forward(x, w1, b1, gamma, beta, w2, b2)
    jax.block_until_ready(out)
    ref = reference_forward(x, w1, b1, gamma, beta, w2, b2)
    assert out.shape == (8, out_dim)
    assert jnp.allclose(out, ref, atol=1e-4, rtol=1e-4), "fused path mismatch"
    assert jnp.allclose(jnp.linalg.norm(out, axis=1), 1.0, atol=1e-4)

    # 2) larger batch with forced small tiles -> tiled two-pass path
    #    (exercises cross-tile BN stats + padded-row masking: 20 -> 24 rows)
    x_big = jax.random.normal(kx2, (20, input_dim), jnp.float32)
    out_big = simclr_forward(x_big, w1, b1, gamma, beta, w2, b2, block_n=8)
    jax.block_until_ready(out_big)
    ref_big = reference_forward(x_big, w1, b1, gamma, beta, w2, b2)
    assert out_big.shape == (20, out_dim)
    assert jnp.allclose(out_big, ref_big, atol=1e-4, rtol=1e-4), "tiled path mismatch"

    # 3) bf16 compute path (MXU-native weights, f32 accumulation / BN / norm)
    out_bf = simclr_forward(x, w1, b1, gamma, beta, w2, b2, compute_dtype=jnp.bfloat16)
    jax.block_until_ready(out_bf)
    assert out_bf.shape == (8, out_dim)
    assert jnp.allclose(jnp.linalg.norm(out_bf, axis=1), 1.0, atol=1e-3)
    assert jnp.allclose(out_bf, ref, atol=0.1, rtol=0.1), "bf16 path diverged too far"

    print("KERNEL_OK")
</pallas_src>

<mosaic_0001>
module attributes {stable_mosaic.version = 11 : i64} {
  func.func @_fused_kernel(%arg0: memref<8x64xf32, #tpu.memory_space<vmem>>, %arg1: memref<64x128xf32, #tpu.memory_space<vmem>>, %arg2: memref<1x128xf32, #tpu.memory_space<vmem>>, %arg3: memref<1x128xf32, #tpu.memory_space<vmem>>, %arg4: memref<1x128xf32, #tpu.memory_space<vmem>>, %arg5: memref<128x128xf32, #tpu.memory_space<vmem>>, %arg6: memref<1x128xf32, #tpu.memory_space<vmem>>, %arg7: memref<8x128xf32, #tpu.memory_space<vmem>>) attributes {dimension_semantics = [], scalar_prefetch = 0 : i64, scratch_operands = 0 : i64, tpu.core_type = #tpu.core_type<tc>} {
    %c0 = arith.constant 0 : index
    %c0_0 = arith.constant 0 : index
    %0 = vector.load %arg0[%c0, %c0_0] : memref<8x64xf32, #tpu.memory_space<vmem>>, vector<8x64xf32>
    %c0_1 = arith.constant 0 : index
    %c0_2 = arith.constant 0 : index
    %1 = vector.load %arg1[%c0_1, %c0_2] : memref<64x128xf32, #tpu.memory_space<vmem>>, vector<64x128xf32>
    %cst = arith.constant dense<0.000000e+00> : vector<8x128xf32>
    %2 = tpu.matmul %0, %1, %cst {dimension_numbers = #tpu.dot_dimension_numbers<[1], [0], [0], [1], [0, 0, 1, 1], [], []>} : vector<8x64xf32>, vector<64x128xf32>, vector<8x128xf32> -> vector<8x128xf32>
    %c0_3 = arith.constant 0 : index
    %c0_4 = arith.constant 0 : index
    %3 = vector.load %arg2[%c0_3, %c0_4] : memref<1x128xf32, #tpu.memory_space<vmem>>, vector<1x128xf32>
    %4 = vector.broadcast %3 : vector<1x128xf32> to vector<8x128xf32>
    %5 = arith.addf %2, %4 : vector<8x128xf32>
    %cst_5 = arith.constant dense<0.000000e+00> : vector<128xf32>
    %6 = vector.multi_reduction <add>, %5, %cst_5 [0] : vector<8x128xf32> to vector<128xf32>
    %7 = vector.shape_cast %6 : vector<128xf32> to vector<1x128xf32>
    %cst_6 = arith.constant 1.250000e-01 : f32
    %8 = vector.broadcast %cst_6 : f32 to vector<1x128xf32>
    %9 = arith.mulf %7, %8 : vector<1x128xf32>
    %10 = arith.mulf %5, %5 : vector<8x128xf32>
    %cst_7 = arith.constant dense<0.000000e+00> : vector<128xf32>
    %11 = vector.multi_reduction <add>, %10, %cst_7 [0] : vector<8x128xf32> to vector<128xf32>
    %12 = vector.shape_cast %11 : vector<128xf32> to vector<1x128xf32>
    %cst_8 = arith.constant 1.250000e-01 : f32
    %13 = vector.broadcast %cst_8 : f32 to vector<1x128xf32>
    %14 = arith.mulf %12, %13 : vector<1x128xf32>
    %15 = arith.mulf %9, %9 : vector<1x128xf32>
    %16 = arith.subf %14, %15 : vector<1x128xf32>
    %cst_9 = arith.constant 0.000000e+00 : f32
    %17 = vector.broadcast %cst_9 : f32 to vector<1x128xf32>
    %18 = arith.maximumf %16, %17 : vector<1x128xf32>
    %c0_10 = arith.constant 0 : index
    %c0_11 = arith.constant 0 : index
    %19 = vector.load %arg3[%c0_10, %c0_11] : memref<1x128xf32, #tpu.memory_space<vmem>>, vector<1x128xf32>
    %cst_12 = arith.constant 9.99999974E-6 : f32
    %20 = vector.broadcast %cst_12 : f32 to vector<1x128xf32>
    %21 = arith.addf %18, %20 : vector<1x128xf32>
    %22 = math.rsqrt %21 : vector<1x128xf32>
    %23 = arith.mulf %19, %22 : vector<1x128xf32>
    %c0_13 = arith.constant 0 : index
    %c0_14 = arith.constant 0 : index
    %24 = vector.load %arg4[%c0_13, %c0_14] : memref<1x128xf32, #tpu.memory_space<vmem>>, vector<1x128xf32>
    %25 = arith.mulf %9, %23 : vector<1x128xf32>
    %26 = arith.subf %24, %25 : vector<1x128xf32>
    %27 = vector.broadcast %23 : vector<1x128xf32> to vector<8x128xf32>
    %28 = arith.mulf %5, %27 : vector<8x128xf32>
    %29 = vector.broadcast %26 : vector<1x128xf32> to vector<8x128xf32>
    %30 = arith.addf %28, %29 : vector<8x128xf32>
    %cst_15 = arith.constant 0.000000e+00 : f32
    %31 = vector.broadcast %cst_15 : f32 to vector<8x128xf32>
    %32 = arith.maximumf %30, %31 : vector<8x128xf32>
    %c0_16 = arith.constant 0 : index
    %c0_17 = arith.constant 0 : index
    %33 = vector.load %arg5[%c0_16, %c0_17] : memref<128x128xf32, #tpu.memory_space<vmem>>, vector<128x128xf32>
    %cst_18 = arith.constant dense<0.000000e+00> : vector<8x128xf32>
    %34 = tpu.matmul %32, %33, %cst_18 {dimension_numbers = #tpu.dot_dimension_numbers<[1], [0], [0], [1], [0, 0, 1, 1], [], []>} : vector<8x128xf32>, vector<128x128xf32>, vector<8x128xf32> -> vector<8x128xf32>
    %c0_19 = arith.constant 0 : index
    %c0_20 = arith.constant 0 : index
    %35 = vector.load %arg6[%c0_19, %c0_20] : memref<1x128xf32, #tpu.memory_space<vmem>>, vector<1x128xf32>
    %36 = vector.broadcast %35 : vector<1x128xf32> to vector<8x128xf32>
    %37 = arith.addf %34, %36 : vector<8x128xf32>
    %38 = arith.mulf %37, %37 : vector<8x128xf32>
    %cst_21 = arith.constant dense<0.000000e+00> : vector<8xf32>
    %39 = vector.multi_reduction <add>, %38, %cst_21 [1] : vector<8x128xf32> to vector<8xf32>
    %40 = vector.shape_cast %39 : vector<8xf32> to vector<8x1xf32>
    %cst_22 = arith.constant 1.000000e-24 : f32
    %41 = vector.broadcast %cst_22 : f32 to vector<8x1xf32>
    %42 = arith.maximumf %40, %41 : vector<8x1xf32>
    %43 = math.rsqrt %42 : vector<8x1xf32>
    %44 = vector.broadcast %43 : vector<8x1xf32> to vector<8x128xf32>
    %45 = arith.mulf %37, %44 : vector<8x128xf32>
    %c0_23 = arith.constant 0 : index
    %c0_24 = arith.constant 0 : index
    %46 = vector.load %arg7[%c0_23, %c0_24] : memref<8x128xf32, #tpu.memory_space<vmem>>, vector<8x128xf32>
    tpu.vector_store %arg7[%c0_23, %c0_24], %45 {strides = array<i32>} : memref<8x128xf32, #tpu.memory_space<vmem>>, vector<8x128xf32>,
    return
  }
}

</mosaic_0001>

<bundles_post_ra>
// kernel: tpu_custom_call.1
= control target key start
LH: loop header
LB: loop body
LE: loop exit
PB: predicated region body
PF: predicated region fallthrough
CT: control target
= control target key end

     0   :  { %12 = vsyncpa [#allocation3], 0  ;;  %s411_s0 = inlined_call_operand.hbm [shape: f32[8,64], index: 0, kind: input, shape index: {}]   ;;  %s412_s1 = inlined_call_operand.hbm [shape: f32[64,128], index: 1, kind: input, shape index: {}]   ;;  %s413_s2 = inlined_call_operand.vmem [shape: f32[1,128], index: 2, kind: input, shape index: {}]   ;;  %s414_s3 = inlined_call_operand.vmem [shape: f32[1,128], index: 3, kind: input, shape index: {}]   ;;  %s415_s4 = inlined_call_operand.vmem [shape: f32[1,128], index: 4, kind: input, shape index: {}]   ;;  %s416_s5 = inlined_call_operand.hbm [shape: f32[128,128], index: 5, kind: input, shape index: {}]   ;;  %s417_s6 = inlined_call_operand.vmem [shape: f32[1,128], index: 6, kind: input, shape index: {}]   ;;  %s418_s7 = inlined_call_operand.hbm [shape: f32[8,128], index: 7, kind: output, shape index: {}]  }
   0x1   :  { %13 = vsyncpa [#allocation6], 0  ;;  %s30_s26 = sshll.u32 %s412_s1, 4  ;;  %s31_s26 = int_to_ptr.hbm [resolvable:$true] %s30_s26 }
   0x2   :  { %14 = vsyncpa [#allocation4], 0  ;;  %s341_s27 = smov [#allocation5]   ;;  %s20_s8 = sshll.u32 %s411_s0, 4  ;;  %s21_s8 = int_to_ptr.hbm [resolvable:$true] %s20_s8 }
   0x3   :  { %s32_s28 = sshll.u32 %s341_s27, 4  ;;  %s342_s9 = smov 128   ;;  %s33_s28 = int_to_ptr.vmem [resolvable:$true] %s32_s28 }
   0x4   :  { %s343_s10 = smov 8   ;;  %s344_s11 = smov [#allocation2]  }
   0x5   :  { %38 = dma.hbm_to_vmem [thread:$0]  %s31_s26, 1024, %s33_s28, [#allocation6], %s342_s9, %s342_s9, %s343_s10  }
   0x6   :  { %s22_s12 = sshll.u32 %s344_s11, 4  ;;  %s49_s15 = sshll.u32 %s416_s5, 4  ;;  %s23_s12 = int_to_ptr.vmem [resolvable:$true] %s22_s12  ;;  %s50_s15 = int_to_ptr.hbm [resolvable:$true] %s49_s15 }
   0x7   :  { %25 = dma.hbm_to_vmem [thread:$0]  %s21_s8, 128, %s23_s12, [#allocation3]  }
   0x8   :  { %s345_s1 = smov [#allocation7]  }
   0x9   :  { %s51_s16 = sshll.u32 %s345_s1, 4  ;;  %s52_s16 = int_to_ptr.vmem [resolvable:$true] %s51_s16 }
   0xa   :  { %57 = dma.hbm_to_vmem [thread:$0]  %s50_s15, 2048, %s52_s16, [#allocation6], %s342_s9, %s342_s9, %s343_s10  }
   0xb   :  { %335 = dma.done.wait [#allocation3], 128  }
   0xc   :  { %336 = vsyncadd [#allocation3], 4294967168 }
   0xd   :  { %337 = dma.done.wait [#allocation6], 3072  }
   0xe   :  { %338 = vsyncadd [#allocation6], 4294964224  ;;  %v80_v0 = vld [vmem:[#allocation5 + $0x38] sm:$0xff]  ;;  %v79_v1 = vld [vmem:[#allocation5 + $0x30] sm:$0xff]  ;;  %vm85_vm0 = vcmask 523264  }
   0xf   :  { %97 = vmatpush.msra.mxu0 %v80_v0  ;;  %v78_v2 = vld [vmem:[#allocation5 + $0x28] sm:$0xff]  ;;  %v77_v3 = vld [vmem:[#allocation5 + $0x20] sm:$0xff]  ;;  %v76_v4 = vld [vmem:[#allocation5 + $0x18] sm:$0xff] }
  0x10   :  { %v75_v5 = vld [vmem:[#allocation5 + $0x10] sm:$0xff]  ;;  %v74_v6 = vld [vmem:[#allocation5 + $0x8] sm:$0xff]  ;;  %v73_v7 = vld [vmem:[#allocation5] sm:$0xff] }
  0x11   :  { %98 = vmatpush.msra.mxu0 %v79_v1  ;;  %v72_v8 = vld [vmem:[#allocation2] sm:$0xff]  ;;  %v166_v10 = vld [vmem:[#allocation7 + $0x70] sm:$0xff]  ;;  %v165_v11 = vld [vmem:[#allocation7 + $0x68] sm:$0xff] }
  0x12   :  { %v167_v9 = vld [vmem:[#allocation7 + $0x78] sm:$0xff]  ;;  %v164_v12 = vld [vmem:[#allocation7 + $0x60] sm:$0xff]  ;;  %v162_v14 = vld [vmem:[#allocation7 + $0x50] sm:$0xff] }
  0x13   :  { %99 = vmatpush.msra.mxu0 %v78_v2  ;;  %172 = vmatpush.msra.mxu1 %v167_v9  ;;  %v163_v13 = vld [vmem:[#allocation7 + $0x58] sm:$0xff]  ;;  %v161_v15 = vld [vmem:[#allocation7 + $0x48] sm:$0xff]  ;;  %v160_v16 = vld [vmem:[#allocation7 + $0x40] sm:$0xff] }
  0x14   :  { %v233_v17 = vld [vmem:[%s413_s2] ss:$0 sm:$0xff]  ;;  %v158_v19 = vld [vmem:[#allocation7 + $0x30] sm:$0xff]  ;;  %v157_v22 = vld [vmem:[#allocation7 + $0x28] sm:$0xff] }
  0x15   :  { %100 = vmatpush.msra.mxu0 %v77_v3  ;;  %173 = vmatpush.msra.mxu1 %v166_v10  ;;  %v159_v18 = vld [vmem:[#allocation7 + $0x38] sm:$0xff]  ;;  %v156_v25 = vld [vmem:[#allocation7 + $0x20] sm:$0xff]  ;;  %v154_v31 = vld [vmem:[#allocation7 + $0x10] sm:$0xff] }
  0x16   :  { %v155_v28 = vld [vmem:[#allocation7 + $0x18] sm:$0xff]  ;;  %v153_v34 = vld [vmem:[#allocation7 + $0x8] sm:$0xff]  ;;  %v152_v36 = vld [vmem:[#allocation7] sm:$0xff] }
  0x17   :  { %101 = vmatpush.msra.mxu0 %v76_v4  ;;  %174 = vmatpush.msra.mxu1 %v165_v11  ;;  %v127_v52 = vld [vmem:[%s414_s3] sm:$0x1]  ;;  %s346_s3 = smov [#allocation8]  }
  0x18   :  { %v140_v56 = vld [vmem:[%s415_s4] sm:$0x1]  ;;  %s213_s4 = sshll.u32 %s346_s3, 4  ;;  %s214_s4 = int_to_ptr.vmem [resolvable:$true] %s213_s4 }
  0x19   :  { %102 = vmatpush.msra.mxu0 %v75_v5  ;;  %175 = vmatpush.msra.mxu1 %v164_v12  ;;  %v234_v0 = vld [vmem:[%s417_s6] ss:$0 sm:$0xff]  ;;  %s215_s6 = sshll.u32 %s418_s7, 4  ;;  %s216_s6 = int_to_ptr.hbm [resolvable:$true] %s215_s6 }
  0x1b   :  { %103 = vmatpush.msra.mxu0 %v74_v6  ;;  %176 = vmatpush.msra.mxu1 %v163_v13 }
  0x1d   :  { %104 = vmatpush.msra.mxu0 %v73_v7  ;;  %177 = vmatpush.msra.mxu1 %v162_v14 }
  0x1e   :  { %226 = vmatmul.msk.f32.vlgmr.msra.gmra.mxu0 %vm85_vm0, %v72_v8 }
  0x1f   :  { %178 = vmatpush.msra.mxu1 %v161_v15 }
  0x21   :  { %179 = vmatpush.msra.mxu1 %v160_v16 }
  0x23   :  { %180 = vmatpush.msra.mxu1 %v159_v18 }
  0x25   :  { %181 = vmatpush.msra.mxu1 %v158_v19 }
  0x27   :  { %182 = vmatpush.msra.mxu1 %v157_v22 }
  0x29   :  { %183 = vmatpush.msra.mxu1 %v156_v25 }
  0x2b   :  { %184 = vmatpush.msra.mxu1 %v155_v28 }
  0x2d   :  { %185 = vmatpush.msra.mxu1 %v154_v31 }
  0x2f   :  { %186 = vmatpush.msra.mxu1 %v153_v34 }
  0x31   :  { %187 = vmatpush.msra.mxu1 %v152_v36 }
  0x9b   :  { %v106_v20 = vpop.f32.mrf.mxu0 }
  0x9c   :  { %v107_v21 = vadd.f32 %v233_v17, %v106_v20 }
  0x9e   :  { %v109_v23 = vrot.slane %v107_v21, 4  ;;  %v116_v24 = vmul.f32 %v107_v21, %v107_v21 }
  0xa0   :  { %v110_v26 = vadd.f32 %v109_v23, %v107_v21  ;;  %v117_v27 = vrot.slane %v116_v24, 4 }
  0xa2   :  { %v111_v29 = vrot.slane %v110_v26, 2  ;;  %v118_v30 = vadd.f32 %v117_v27, %v116_v24 }
  0xa4   :  { %v112_v32 = vadd.f32 %v111_v29, %v110_v26  ;;  %v119_v33 = vrot.slane %v118_v30, 2 }
  0xa6   :  { %v120_v35 = vadd.f32 %v119_v33, %v118_v30  ;;  %v113_v37 = vrot.slane %v112_v32, 1 }
  0xa8   :  { %v121_v38 = vrot.slane %v120_v35, 1  ;;  %v114_v39 = vadd.f32 %v113_v37, %v112_v32 }
  0xaa   :  { %v122_v40 = vadd.f32 %v121_v38, %v120_v35  ;;  %v115_v41 = vmul.f32 0.125, %v114_v39 }
  0xac   :  { %v123_v42 = vmul.f32 0.125, %v122_v40  ;;  %v124_v43 = vmul.f32 %v115_v41, %v115_v41 }
  0xae   :  { %v125_v44 = vsub.f32 %v123_v42, %v124_v43 }
  0xb0   :  { %v126_v45 = vmax.f32 %v125_v44, 0.0 }
  0xb2   :  { %v128_v46 = vadd.f32 1e-05, %v126_v45 }
  0xb4   :  { %235 = vrsqrt.f32 %v128_v46  ;;  %vm135_vm2 = vweird.f32 %v128_v46 }
  0xba   :  { %v236_v47 = vpop.eup %235 }
  0xbb   :  { %v130_v48 = vmul.f32 %v236_v47, %v128_v46  ;;  %vm136_vm1 = vweird.f32 %v236_v47 }
  0xbc   :  { %vm137_vm3 = vmor %vm135_vm2, %vm136_vm1 }
  0xbd   :  { %v131_v49 = vmul.f32 %v236_v47, %v130_v48 }
  0xbf   :  { %v132_v50 = vmul.f32 0.5, %v131_v49 }
  0xc1   :  { %v133_v51 = vsub.f32 1.5, %v132_v50 }
  0xc3   :  { %v134_v53 = vmul.f32 %v236_v47, %v133_v51 }
  0xc5   :  { %v138_v54 = vsel %vm137_vm3, %v236_v47, %v134_v53 }
  0xc6   :  { %v139_v55 = vmul.f32 %v138_v54, %v127_v52 }
  0xc8   :  { %v141_v57 = vmul.f32 %v139_v55, %v115_v41  ;;  %v144_v58 = vperm.slane %v139_v55, 0 }
  0xca   :  { %v142_v59 = vsub.f32 %v140_v56, %v141_v57  ;;  %v146_v60 = vmul.f32 %v144_v58, %v107_v21 }
  0xcc   :  { %v148_v61 = vperm.slane %v142_v59, 0 }
  0xce   :  { %v150_v62 = vadd.f32 %v148_v61, %v146_v60 }
  0xd0   :  { %v151_v63 = vmax.f32 %v150_v62, 0.0 }
  0xd2   :  { %188 = vmatmul.f32.vlgmr.msra.gmra.mxu1 %v151_v63 }
 0x14f   :  { %v189_v1 = vpop.f32.mrf.mxu1 }
 0x150   :  { %v190_v2 = vadd.f32 %v234_v0, %v189_v1 }
 0x152   :  { %v192_v3 = vmul.f32 %v190_v2, %v190_v2 }
 0x154   :  { %193 = vadd.xlane.f32.xlu0 %v192_v3 }
 0x1c7   :  { %v194_v4 = vpop.xlane.xlu0 %193 }
 0x1c8   :  { %v195_v5 = vmax.f32 %v194_v4, 1e-24 }
 0x1ca   :  { %237 = vrsqrt.f32 %v195_v5  ;;  %vm202_vm5 = vweird.f32 %v195_v5 }
 0x1d0   :  { %v238_v6 = vpop.eup %237 }
 0x1d1   :  { %v197_v7 = vmul.f32 %v238_v6, %v195_v5  ;;  %vm203_vm4 = vweird.f32 %v238_v6 }
 0x1d2   :  { %vm204_vm6 = vmor %vm202_vm5, %vm203_vm4 }
 0x1d3   :  { %v198_v8 = vmul.f32 %v238_v6, %v197_v7 }
 0x1d5   :  { %v199_v9 = vmul.f32 0.5, %v198_v8 }
 0x1d7   :  { %v200_v10 = vsub.f32 1.5, %v199_v9 }
 0x1d9   :  { %v201_v11 = vmul.f32 %v238_v6, %v200_v10 }
 0x1db   :  { %v205_v12 = vsel %vm204_vm6, %v238_v6, %v201_v11 }
 0x1dc   :  { %v206_v13 = vmul.f32 %v205_v12, %v190_v2 }
 0x1de   :  { %207 = vst [vmem:[#allocation8] sm:$0xff] %v206_v13 }
 0x1df   :  { %218 = dma.vmem_to_hbm [thread:$0]  %s214_s4, 128, %s216_s6, [#allocation4]  }
 0x1e0   :  { %339 = dma.done.wait [#allocation4], 128  }
 0x1e1   :  { %340 = vsyncadd [#allocation4], 4294967168 }
 0x1e2   :  { %223 = vsyncpa [#allocation3], 1 }
 0x1e3   :  { %224 = vsyncpa [#allocation6], 1 }
 0x1e4   :  { %225 = vsyncpa [#allocation4], 1 }

</bundles_post_ra>
